<compile_context>
chip_gen: v7x
topology: tpu7x:2x2x1
jax: 0.10.0
libtpu: 0.0.40
codegen_flags: <defaults>
</compile_context>

<pallas_src>
import functools
import math

import jax
import jax.numpy as jnp
from jax.experimental import pallas as pl
from jax.experimental.pallas import tpu as pltpu


# Tile caps: worst-case buffered footprint (x:2, w:3, out:2 buffers + f32 acc)
# is ~22 MiB at f32 / ~12 MiB at bf16 -> safe under v7x's 64 MiB physical VMEM
# and inside a raised scoped limit on v5e/v6e (128 MiB physical).
_TM_CAP = 512
_TN_CAP = 1024
_TK_CAP = 1024
_LANE = 128
_VMEM_LIMIT_FLOOR = 32 * 1024 * 1024
_VMEM_LIMIT_CAP = 48 * 1024 * 1024   # never exceed: v7x physical VMEM is 64 MiB


def _round_up(x, m):
    return (x + m - 1) // m * m


def _sublane_align(dtype):
    # Sub-32-bit dtypes pack along sublanes -> align M accordingly.
    return {4: 8, 2: 16, 1: 32}.get(jnp.dtype(dtype).itemsize, 8)


def _choose_tile(dim, cap, align):
    """Pick a tile (multiple of `align`, <= cap).  Minimize #blocks first
    (HBM re-streaming of the other operand), padding waste second, preferring
    larger tiles on ties.  The dim is then padded UP to a multiple of the tile,
    so there is no divisibility cliff (no fallback to tiny tiles)."""
    dim_aligned = _round_up(dim, align)
    if dim_aligned <= cap:
        return dim_aligned
    best_key, best_t = None, align
    for t in range(cap, align - 1, -align):
        nblk = -(-dim_aligned // t)
        waste = nblk * t - dim_aligned
        key = (nblk, waste, -t)
        if best_key is None or key < best_key:
            best_key, best_t = key, t
    return best_t


def _linear_kernel(x_ref, w_ref, b_ref, o_ref, acc_ref):
    k = pl.program_id(2)
    nk = pl.num_programs(2)

    partial = jnp.dot(
        x_ref[...], w_ref[...], preferred_element_type=jnp.float32
    )

    @pl.when(k == 0)
    def _init():
        acc_ref[...] = jnp.zeros_like(acc_ref)

    @pl.when(k < nk - 1)
    def _accumulate():
        acc_ref[...] += partial

    @pl.when(k == nk - 1)
    def _finalize():
        # Fuse the last partial product and the bias into the epilogue: saves a
        # full tm x tn f32 accumulator read-modify-write per output tile.
        o_ref[...] = (
            acc_ref[...] + partial + b_ref[...].astype(jnp.float32)
        ).astype(o_ref.dtype)


@functools.partial(jax.jit, static_argnames=("n_out",))
def _linear_apply(x, w_pad, b_pad, *, n_out):
    orig_shape = x.shape
    if x.ndim != 2:
        x = x.reshape(-1, orig_shape[-1])
    M, K = x.shape
    K_pad, N_pad = w_pad.shape
    dtype = x.dtype
    itemsize = jnp.dtype(dtype).itemsize
    m_align = _sublane_align(dtype)

    tm = _choose_tile(M, _TM_CAP, m_align)
    tk = _choose_tile(K, _TK_CAP, _LANE)
    tn = _choose_tile(n_out, _TN_CAP, _LANE)
    assert _round_up(K, tk) == K_pad and _round_up(n_out, tn) == N_pad, (
        "weight/bias were padded with a different plan; use pad_linear_params"
    )
    M_pad = _round_up(M, tm)

    # v7x megacore: make sure at least one *parallel* grid axis has >= 2 blocks
    # (otherwise one TensorCore idles).  Prefer splitting N (only the tiny X is
    # re-streamed); splitting M would re-stream W.  Costs ~0.35us on v5e/v6e.
    if M_pad // tm == 1 and N_pad // tn == 1:
        if tn % (2 * _LANE) == 0:
            tn //= 2
        elif tm % (2 * m_align) == 0:
            tm //= 2
            M_pad = _round_up(M, tm)

    grid = (M_pad // tm, N_pad // tn, K_pad // tk)

    # Pad activations only when actually needed (params are pre-padded at init).
    if M_pad != M or K_pad != K:
        x = jnp.pad(x, ((0, M_pad - M), (0, K_pad - K)))

    # Small-M shapes are pure weight streaming: deepen the W pipeline so DMA
    # latency is hidden behind the short MXU bursts.
    w_bufs = 2
    if grid[0] == 1 and grid[1] * grid[2] >= 3:
        w_bufs = 3
        w_spec = pl.BlockSpec(
            (tk, tn), lambda i, j, k: (k, j), pipeline_mode=pl.Buffered(3)
        )
    else:
        w_spec = pl.BlockSpec((tk, tn), lambda i, j, k: (k, j))

    footprint = (
        2 * tm * tk * itemsize          # x (double buffered)
        + w_bufs * tk * tn * itemsize   # weight
        + 2 * tm * tn * itemsize        # output
        + tm * tn * 4                   # f32 accumulator scratch
        + 2 * tn * itemsize             # bias
    )
    vmem_limit = int(
        min(_VMEM_LIMIT_CAP, max(_VMEM_LIMIT_FLOOR, footprint * 3 // 2))
    )

    gi, gj, gk = grid
    cost = pl.CostEstimate(
        flops=2 * M_pad * N_pad * K_pad,
        transcendentals=0,
        bytes_accessed=(
            itemsize * gj * M_pad * K_pad      # X re-streamed once per N block
            + itemsize * gi * K_pad * N_pad    # W re-streamed once per M block
            + itemsize * M_pad * N_pad         # output written once
        ),
    )

    out_padded = pl.pallas_call(
        _linear_kernel,
        out_shape=jax.ShapeDtypeStruct((M_pad, N_pad), dtype),
        grid_spec=pltpu.PrefetchScalarGridSpec(
            num_scalar_prefetch=0,
            grid=grid,
            in_specs=[
                pl.BlockSpec((tm, tk), lambda i, j, k: (i, k)),
                w_spec,
                pl.BlockSpec((1, tn), lambda i, j, k: (0, j)),
            ],
            out_specs=pl.BlockSpec((tm, tn), lambda i, j, k: (i, j)),
            scratch_shapes=[pltpu.VMEM((tm, tn), jnp.float32)],
        ),
        compiler_params=pltpu.CompilerParams(
            dimension_semantics=("parallel", "parallel", "arbitrary"),
            vmem_limit_bytes=vmem_limit,
        ),
        cost_estimate=cost,
    )(x, w_pad, b_pad)

    out = out_padded[:M, :n_out]
    if len(orig_shape) != 2:
        out = out.reshape(orig_shape[:-1] + (n_out,))
    return out


def pad_linear_params(weight_t, bias):
    """Pad the [K, N] weight (torch weight transposed) and [N] bias ONCE, at
    init time, to the kernel's tile-aligned shapes.  Zero padding contributes
    nothing to the dot product, so semantics are unchanged."""
    K, N = weight_t.shape
    tk = _choose_tile(K, _TK_CAP, _LANE)
    tn = _choose_tile(N, _TN_CAP, _LANE)
    K_pad = _round_up(K, tk)
    N_pad = _round_up(N, tn)
    w_pad = jnp.pad(weight_t, ((0, K_pad - K), (0, N_pad - N)))
    b_pad = jnp.pad(bias, (0, N_pad - N)).reshape(1, N_pad)
    return w_pad, b_pad


def make_linear(weight_t, bias):
    """Build fwd(x) = x @ weight_t + bias with params pre-padded at init (the
    per-call path never touches/pads the weight in HBM)."""
    _, n_out = weight_t.shape
    w_pad, b_pad = pad_linear_params(weight_t, bias)

    def fwd(x):
        return _linear_apply(x, w_pad, b_pad, n_out=n_out)

    return fwd


def init_linear_params(key, in_dim, out_dim, dtype=jnp.float32):
    """kaiming_uniform (fan_in, a=sqrt(5)) weight init + PyG default bias init
    (uniform in +/- 1/sqrt(fan_in)), matching torch_geometric.nn.Linear."""
    kw, kb = jax.random.split(key)
    a = math.sqrt(5.0)
    bound_w = math.sqrt(6.0 / ((1.0 + a * a) * in_dim))
    # torch weight shape is (out_dim, in_dim); sample then transpose to (in, out)
    w = jax.random.uniform(
        kw, (out_dim, in_dim), dtype=dtype, minval=-bound_w, maxval=bound_w
    )
    weight_t = jnp.transpose(w)  # [in_dim, out_dim]
    bound_b = 1.0 / math.sqrt(in_dim)
    bias = jax.random.uniform(
        kb, (out_dim,), dtype=dtype, minval=-bound_b, maxval=bound_b
    )
    return weight_t, bias


def _reference(x, weight_t, bias):
    return (
        jnp.dot(x, weight_t, precision=jax.lax.Precision.HIGHEST)
        + bias[None, :]
    )


if __name__ == "__main__":
    key = jax.random.PRNGKey(0)
    kx1, kp1, kx2, kp2, kx3, kp3 = jax.random.split(key, 6)

    # 1) Small graph-feature shapes typical for this module (nodes=16, 32->64).
    #    Single K step; parallel axis split so v7x uses both TensorCores.
    M1, IN1, OUT1 = 16, 32, 64
    x1 = jax.random.normal(kx1, (M1, IN1), dtype=jnp.float32)
    w1_t, b1 = init_linear_params(kp1, IN1, OUT1)
    lin1 = make_linear(w1_t, b1)
    out1 = jax.block_until_ready(lin1(x1))
    ref1 = _reference(x1, w1_t, b1)
    assert out1.shape == (M1, OUT1)
    assert jnp.allclose(out1, ref1, atol=1e-2, rtol=1e-2)

    # 2) Tiled f32 path: 2 K-steps (accumulator carry + bias added once on the
    #    last step), N split into 2 parallel blocks, 3-deep weight pipeline.
    M2, IN2, OUT2 = 512, 2048, 256
    x2 = jax.random.normal(kx2, (M2, IN2), dtype=jnp.float32)
    w2_t, b2 = init_linear_params(kp2, IN2, OUT2)
    lin2 = make_linear(w2_t, b2)
    out2 = jax.block_until_ready(lin2(x2))
    ref2 = _reference(x2, w2_t, b2)
    assert out2.shape == (M2, OUT2)
    assert jnp.allclose(out2, ref2, atol=1e-2, rtol=1e-2)

    # 3) bf16 path (MXU-native on v6e/v7x): sublane alignment 16, long K loop,
    #    odd K exercising pad-to-tile (no divisibility cliff).
    M3, IN3, OUT3 = 16, 2304, 256
    x3 = jax.random.normal(kx3, (M3, IN3), dtype=jnp.float32).astype(
        jnp.bfloat16
    )
    w3_t, b3 = init_linear_params(kp3, IN3, OUT3, dtype=jnp.bfloat16)
    lin3 = make_linear(w3_t, b3)
    out3 = jax.block_until_ready(lin3(x3))
    ref3 = _reference(
        x3.astype(jnp.float32), w3_t.astype(jnp.float32), b3.astype(jnp.float32)
    )
    assert out3.shape == (M3, OUT3)
    assert jnp.allclose(out3.astype(jnp.float32), ref3, atol=5e-2, rtol=5e-2)

    print("KERNEL_OK")
</pallas_src>

<mosaic_0001>
module attributes {stable_mosaic.version = 11 : i64} {
  func.func @_linear_kernel(%arg0: i32, %arg1: i32, %arg2: i32, %arg3: memref<8x128xf32, #tpu.memory_space<vmem>>, %arg4: memref<128x128xf32, #tpu.memory_space<vmem>>, %arg5: memref<1x128xf32, #tpu.memory_space<vmem>>, %arg6: memref<8x128xf32, #tpu.memory_space<vmem>>, %arg7: memref<8x128xf32, #tpu.memory_space<vmem>>) attributes {dimension_semantics = [#tpu.dimension_semantics<parallel>, #tpu.dimension_semantics<parallel>, #tpu.dimension_semantics<arbitrary>], iteration_bounds = array<i64: 2, 1, 1>, scalar_prefetch = 0 : i64, scratch_operands = 1 : i64, tpu.core_type = #tpu.core_type<tc>, window_params = [{transform_indices = @transform_0, window_bounds = array<i64: 8, 128>}, {transform_indices = @transform_1, window_bounds = array<i64: 128, 128>}, {transform_indices = @transform_2, window_bounds = array<i64: 1, 128>}, {transform_indices = @transform_3, window_bounds = array<i64: 8, 128>}]} {
    %c0 = arith.constant 0 : index
    %c0_0 = arith.constant 0 : index
    %0 = vector.load %arg3[%c0, %c0_0] : memref<8x128xf32, #tpu.memory_space<vmem>>, vector<8x128xf32>
    %c0_1 = arith.constant 0 : index
    %c0_2 = arith.constant 0 : index
    %1 = vector.load %arg4[%c0_1, %c0_2] : memref<128x128xf32, #tpu.memory_space<vmem>>, vector<128x128xf32>
    %cst = arith.constant dense<0.000000e+00> : vector<8x128xf32>
    %2 = tpu.matmul %0, %1, %cst {dimension_numbers = #tpu.dot_dimension_numbers<[1], [0], [0], [1], [0, 0, 1, 1], [], []>} : vector<8x128xf32>, vector<128x128xf32>, vector<8x128xf32> -> vector<8x128xf32>
    %c0_i32 = arith.constant 0 : i32
    %3 = arith.cmpi eq, %arg2, %c0_i32 : i32
    %4 = arith.extui %3 : i1 to i32
    %c0_i32_3 = arith.constant 0 : i32
    %5 = arith.cmpi ne, %4, %c0_i32_3 : i32
    scf.if %5 {
      %cst_8 = arith.constant 0.000000e+00 : f32
      %12 = vector.broadcast %cst_8 : f32 to vector<8x128xf32>
      %c0_9 = arith.constant 0 : index
      %c0_10 = arith.constant 0 : index
      %13 = vector.load %arg7[%c0_9, %c0_10] : memref<8x128xf32, #tpu.memory_space<vmem>>, vector<8x128xf32>
      tpu.vector_store %arg7[%c0_9, %c0_10], %12 {strides = array<i32>} : memref<8x128xf32, #tpu.memory_space<vmem>>, vector<8x128xf32>,
    } else {
    }
    %c0_i32_4 = arith.constant 0 : i32
    %6 = arith.cmpi slt, %arg2, %c0_i32_4 : i32
    %7 = arith.extui %6 : i1 to i32
    %c0_i32_5 = arith.constant 0 : i32
    %8 = arith.cmpi ne, %7, %c0_i32_5 : i32
    scf.if %8 {
      %c0_8 = arith.constant 0 : index
      %c0_9 = arith.constant 0 : index
      %12 = vector.load %arg7[%c0_8, %c0_9] : memref<8x128xf32, #tpu.memory_space<vmem>>, vector<8x128xf32>
      %13 = arith.addf %12, %2 : vector<8x128xf32>
      %c0_10 = arith.constant 0 : index
      %c0_11 = arith.constant 0 : index
      %14 = vector.load %arg7[%c0_10, %c0_11] : memref<8x128xf32, #tpu.memory_space<vmem>>, vector<8x128xf32>
      tpu.vector_store %arg7[%c0_10, %c0_11], %13 {strides = array<i32>} : memref<8x128xf32, #tpu.memory_space<vmem>>, vector<8x128xf32>,
    } else {
    }
    %c0_i32_6 = arith.constant 0 : i32
    %9 = arith.cmpi eq, %arg2, %c0_i32_6 : i32
    %10 = arith.extui %9 : i1 to i32
    %c0_i32_7 = arith.constant 0 : i32
    %11 = arith.cmpi ne, %10, %c0_i32_7 : i32
    scf.if %11 {
      %c0_8 = arith.constant 0 : index
      %c0_9 = arith.constant 0 : index
      %12 = vector.load %arg7[%c0_8, %c0_9] : memref<8x128xf32, #tpu.memory_space<vmem>>, vector<8x128xf32>
      %13 = arith.addf %12, %2 : vector<8x128xf32>
      %c0_10 = arith.constant 0 : index
      %c0_11 = arith.constant 0 : index
      %14 = vector.load %arg5[%c0_10, %c0_11] : memref<1x128xf32, #tpu.memory_space<vmem>>, vector<1x128xf32>
      %15 = vector.broadcast %14 : vector<1x128xf32> to vector<8x128xf32>
      %16 = arith.addf %13, %15 : vector<8x128xf32>
      %c0_12 = arith.constant 0 : index
      %c0_13 = arith.constant 0 : index
      %17 = vector.load %arg6[%c0_12, %c0_13] : memref<8x128xf32, #tpu.memory_space<vmem>>, vector<8x128xf32>
      tpu.vector_store %arg6[%c0_12, %c0_13], %16 {strides = array<i32>} : memref<8x128xf32, #tpu.memory_space<vmem>>, vector<8x128xf32>,
    } else {
    }
    return
  }
  func.func @transform_0(%arg0: i32, %arg1: i32, %arg2: i32) -> (i32, i32) {
    %c0_i32 = arith.constant 0 : i32
    return %arg0, %arg2 : i32, i32
  }
  func.func @transform_1(%arg0: i32, %arg1: i32, %arg2: i32) -> (i32, i32) {
    %c0_i32 = arith.constant 0 : i32
    return %arg2, %arg1 : i32, i32
  }
  func.func @transform_2(%arg0: i32, %arg1: i32, %arg2: i32) -> (i32, i32) {
    %c0_i32 = arith.constant 0 : i32
    %c0_i32_0 = arith.constant 0 : i32
    return %c0_i32, %arg1 : i32, i32
  }
  func.func @transform_3(%arg0: i32, %arg1: i32, %arg2: i32) -> (i32, i32) {
    %c0_i32 = arith.constant 0 : i32
    return %arg0, %arg1 : i32, i32
  }
}

</mosaic_0001>

<bundles_post_ra>
// kernel: _linear_apply.1
= control target key start
LH: loop header
LB: loop body
LE: loop exit
PB: predicated region body
PF: predicated region fallthrough
CT: control target
= control target key end

     0   :  { %8 = vsyncpa [#allocation4], 0  ;;  %s923_s0 = inlined_call_operand.vmem [shape: f32[16,128], index: 0, kind: input, shape index: {}]   ;;  %s924_s1 = inlined_call_operand.hbm [shape: f32[128,128], index: 1, kind: input, shape index: {}]   ;;  %s925_s2 = inlined_call_operand.vmem [shape: f32[1,128], index: 2, kind: input, shape index: {}]   ;;  %s926_s3 = inlined_call_operand.hbm [shape: f32[16,128], index: 3, kind: output, shape index: {}]  }
   0x1   :  { %9 = vsyncpa [#allocation5], 0 }
   0x2   :  { %11 = vsyncpa [#allocation5 + $0x1], 0  ;;  %s770_s12 = smov 0   ;;  %s772_s13 = smov 0  }
   0x3   :  { %s774_s14 = smov 0   ;;  %s776_s15 = smov 0  }
   0x4   :  { %s778_s16 = smov 0   ;;  %s780_s17 = smov 0  }
   0x5 LB: > { %s469_s18 = sadd.s32 4294967295, %s741_s17   ;;  %s470_s19 = sadd.s32 4294967294, %s741_s17   ;;  %s741_s17 = sphi %s780_s17, %s17_s17   ;;  %s737_s16 = sphi %s778_s16, %s944_s16   ;;  %s733_s15 = sphi %s776_s15, %s943_s15   ;;  %s729_s14 = sphi %s774_s14, %s942_s14   ;;  %s725_s13 = sphi %s772_s13, %s941_s13   ;;  %s721_s12 = sphi %s770_s12, %s940_s12  }
   0x6   : > { %s36_s20 = sadd.s32 1, %s737_s16  ;;  %s127_s21 = sadd.s32 1, %s729_s14 }
   0x7   : > { %p38_p0 = scmp.ge.s32.totalorder %s36_s20, 2  ;;  %p137_p1 = scmp.ne.s32.totalorder %s729_s14, %s725_s13 }
   0x8   : > { %p138_p2 = scmp.eq.s32.totalorder %s469_s18, 1  ;;  %p143_p3 = scmp.ne.s32.totalorder %s725_s13, %s721_s12 }
   0x9   : > { %s946_s20 = smov (%p38_p0, %s36_s20), 0  ;;  %p144_p5 = scmp.eq.s32.totalorder %s470_s19, 1 }
   0xa   : > { %p810_p4 = por %p138_p2, %p137_p1  ;;  %s122_s23 = ssub.s32 %s737_s16, %s946_s20 }
   0xb   : > { %p471_p6 = scmp.ge.s32.totalorder %s741_s17, 1  ;;  %p125_p7 = scmp.eq.s32.totalorder %s122_s23, 0 }
   0xc   : > { %s931_s22 = scalar_select %p810_p4, 1, 0 }
   0xd   : > { %p817_p8 = por %p144_p5, %p143_p3  ;;  %p151_p9 = scmp.lt.s32.totalorder %s741_s17, 3 }
   0xe   : > { %s823_s25 = scalar_select %p125_p7, %s729_s14, %s127_s21  }
   0xf   : > { %s932_s24 = scalar_select %p817_p8, 1, 0 }
  0x10   : > { %p825_p10 = pnand %p471_p6, %p151_p9  ;;  %p829_p11 = scmp.eq.s32.totalorder %s469_s18, 0 }
  0x11   : > { %s743_s28 = smov [#allocation3]   ;;  %s631_s6 = scalar_lea.hbm %s924_s1, 2048 }
  0x12   : > { %s933_s26 = scalar_select %p825_p10, 1, 0 }
  0x13   : > { %s934_s27 = scalar_select %p829_p11, 1, 0 }
  0x14   : > { %p566_p12 = pneg %p825_p10  ;;  %s167_s29 = sshll.u32 %s743_s28, 4  ;;  %s168_s29 = int_to_ptr.vmem [resolvable:$true] %s167_s29 }
  0x15   : > { %p632_p0 = scmp.ne.s32.totalorder %s924_s1, %s631_s6  ;;  %p638_p5 = scmp.lt.u32.totalorder %s631_s6, %s924_s1 }
  0x16   : > { %p837_p13 = pnand %p829_p11, %p566_p12 }
  0x18   : > { %p633_p1 = pneg %p837_p13 }
  0x1a   : > { %p634_p2 = pnand %p633_p1, %p632_p0 }
  0x1c   : > { %p635_p3 = pneg %p634_p2 }
  0x1e   : > { %p640_p6 = pnand %p638_p5, %p635_p3 }
  0x20   : > { %643 = shalt.err (!%p640_p6)
}
  0x21   : > { %s644_s11 = scalar_lea.vmem %s168_s29, 2048  ;;  %p652_p8 = scmp.lt.s32.totalorder %s168_s29, %s168_s29 }
  0x22   : > { %p645_p7 = scmp.ne.s32.totalorder %s168_s29, %s644_s11  ;;  %p653_p4 = scmp.lt.s32.totalorder %s644_s11, %s644_s11 }
  0x24   : > { %p647_p9 = pnand %p645_p7, %p633_p1  ;;  %p654_p11 = por %p653_p4, %p652_p8 }
  0x26   : > { %p648_p12 = pneg %p647_p9 }
  0x28   : > { %p655_p10 = pnand %p654_p11, %p648_p12 }
  0x2a   : > { %658 = shalt.err (!%p655_p10)
}
  0x2b   : > { %s744_s18 = smov 128   ;;  %s745_s19 = smov 8  }
  0x2c   : > { %569 = dma.hbm_to_vmem [thread:$0]  (!%p837_p13), %s924_s1, 2048, %s168_s29, [#allocation4], %s744_s18, %s744_s18, %s745_s19  }
  0x2d   : > { %p936_p0 = scmp.ne.s32.totalorder %s933_s26, 0 }
  0x2e   : > { %p937_p2 = scmp.ne.s32.totalorder (!%p936_p0), %s934_s27, 0 }
  0x2f   : > { %199 = sbr.rel (%p936_p0) target bundleno = 318 (0x13e), region = 32 }
  0x36   : > { %712 = dma.done.wait (%p937_p2), [#allocation4], 2048  }
  0x37   : > { %714 = vsyncadd (%p937_p2), [#allocation4], 4294965248  ;;  %v746_v0 = vmov 0.0|0.0   ;;  %vm747_vm0 = vmmov 0   ;;  %v748_v1 = vmov 0.0   ;;  %v240_v2 = vld [vmem:[#allocation3] sm:$0xff] }
  0x38   : > { %536 = vmatprep.subr.bf16.mxu0 %v746_v0  ;;  %533 = vmatprep.mubr.msk.f32.mxu0 %vm747_vm0, %v748_v1  ;;  %v241_v3 = vld [vmem:[#allocation3 + $0x8] sm:$0xff]  ;;  %v242_v4 = vld [vmem:[#allocation3 + $0x10] sm:$0xff]  ;;  %v243_v6 = vld [vmem:[#allocation3 + $0x18] sm:$0xff]  ;;  %p228_p4 = scmp.lt.s32.totalorder %s733_s15, 1  ;;  %s225_s4 = sand.u32 1, %s725_s13  }
  0x39   : > { %v537_v5 = vpack.c.bf16 %v241_v3, %v240_v2  ;;  %v540_v7 = vpack.c.bf16 %v243_v6, %v242_v4  ;;  %v244_v8 = vld [vmem:[#allocation3 + $0x20] sm:$0xff]  ;;  %v245_v9 = vld [vmem:[#allocation3 + $0x28] sm:$0xff]  ;;  %v246_v11 = vld [vmem:[#allocation3 + $0x30] sm:$0xff]  ;;  %s477_s5 = sshll.u32 %s225_s4, 3  ;;  %s481_s8 = sshll.u32 %s733_s15, 7 }
  0x3a   : > { %v543_v10 = vpack.c.bf16 %v245_v9, %v244_v8  ;;  %v247_v12 = vld [vmem:[#allocation3 + $0x38] sm:$0xff]  ;;  %v248_v14 = vld [vmem:[#allocation3 + $0x40] sm:$0xff]  ;;  %v249_v15 = vld [vmem:[#allocation3 + $0x48] sm:$0xff]  ;;  %s229_s26 = scalar_select %p228_p4, %s733_s15, 1 }
  0x3b   : > { %538 = vmatpush3.bf16.msra.mxu0 %v537_v5  ;;  %v546_v13 = vpack.c.bf16 %v247_v12, %v246_v11  ;;  %v549_v16 = vpack.c.bf16 %v249_v15, %v248_v14  ;;  %v250_v17 = vld [vmem:[#allocation3 + $0x50] sm:$0xff]  ;;  %v251_v18 = vld [vmem:[#allocation3 + $0x58] sm:$0xff]  ;;  %v252_v20 = vld [vmem:[#allocation3 + $0x60] sm:$0xff]  ;;  %s227_s9 = scalar_lea.vmem [#allocation6], %s477_s5  ;;  %s876_s19 = scalar_lea.hbm %s926_s3, %s481_s8 }
  0x3c   : > { %539 = vmatprep.subr.bf16.mxu0 %v746_v0  ;;  %v552_v19 = vpack.c.bf16 %v251_v18, %v250_v17  ;;  %v253_v21 = vld [vmem:[#allocation3 + $0x68] sm:$0xff]  ;;  %v254_v23 = vld [vmem:[#allocation3 + $0x70] sm:$0xff]  ;;  %v255_v24 = vld [vmem:[#allocation3 + $0x78] sm:$0xff]  ;;  %s478_s27 = sshll.u32 %s229_s26, 3  ;;  %s367_s10 = sshll.u32 %s227_s9, 4  ;;  %s878_s10 = int_to_ptr.vmem [resolvable:$true] %s367_s10 }
  0x3d   : > { %v555_v22 = vpack.c.bf16 %v253_v21, %v252_v20  ;;  %v558_v25 = vpack.c.bf16 %v255_v24, %v254_v23  ;;  %s234_s30 = scalar_lea.vmem %s923_s0, %s478_s27  ;;  %v479_v27 = vld [vmem:[%s925_s2] ss:$0 sm:$0xff]  ;;  %s353_s21 = scalar_lea.sflag [#allocation5], %s225_s4 }
  0x3e   : > { %v239_v26 = vld [vmem:[%s234_s30] sm:$0xff]  ;;  %s659_s23 = scalar_lea.vmem %s878_s10, 128  ;;  %p938_p10 = scmp.ne.s32.totalorder %s931_s22, 0 }
  0x3f   : > { %541 = vmatpush3.bf16.msra.mxu0 %v540_v7  ;;  %p660_p8 = scmp.ne.s32.totalorder %s878_s10, %s659_s23  ;;  %s749_s15 = smov [#allocation6]  }
  0x40   : > { %542 = vmatprep.subr.bf16.mxu0 %v746_v0  ;;  %s663_s26 = sshll.u32 %s749_s15, 4  ;;  %s664_s26 = int_to_ptr.vmem [resolvable:$false] %s663_s26 }
  0x41   : > { %p661_p11 = pnand %p660_p8, %p938_p10  ;;  %s665_s27 = scalar_lea.vmem %s664_s26, 256 }
  0x42   : > { %p666_p1 = scmp.lt.s32.totalorder %s878_s10, %s664_s26  ;;  %p667_p3 = scmp.lt.s32.totalorder %s665_s27, %s659_s23 }
  0x43   : > { %544 = vmatpush3.bf16.msra.mxu0 %v543_v10  ;;  %p662_p13 = pneg %p661_p11 }
  0x44   : > { %545 = vmatprep.subr.bf16.mxu0 %v746_v0  ;;  %p668_p5 = por %p667_p3, %p666_p1 }
  0x46   : > { %p669_p6 = pnand %p668_p5, %p662_p13 }
  0x47   : > { %547 = vmatpush3.bf16.msra.mxu0 %v546_v13 }
  0x48   : > { %548 = vmatprep.subr.bf16.mxu0 %v746_v0 }
  0x4b   : > { %550 = vmatpush3.bf16.msra.mxu0 %v549_v16 }
  0x4c   : > { %551 = vmatprep.subr.bf16.mxu0 %v746_v0 }
  0x4f   : > { %553 = vmatpush3.bf16.msra.mxu0 %v552_v19 }
  0x50   : > { %554 = vmatprep.subr.bf16.mxu0 %v746_v0 }
  0x53   : > { %556 = vmatpush3.bf16.msra.mxu0 %v555_v22 }
  0x54   : > { %557 = vmatprep.subr.bf16.mxu0 %v746_v0 }
  0x57   : > { %559 = vmatpush3.bf16.msra.mxu0 %v558_v25 }
  0x5a   : > { %534 = vmatmul.mubr.f32.vlgmr.msra.gmra.mrb[0].mxu0 %v239_v26 }
 0x12d   : > { %v322_v28 = vpop.f32.mrb[0].mxu0 }
 0x12e   : > { %v350_v29 = vadd.f32 %v479_v27, %v322_v28  ;;  %v535_v30 = vpop.f32.mrb[1].mxu0 }
 0x130   : > { %351 = vst [vmem:[%s227_s9] sm:$0xff] %v350_v29 }
 0x131   : > { %672 = shalt.err (!%p669_p6)
}
 0x132   : > { %s673_s28 = scalar_lea.hbm %s876_s19, 128  ;;  %s677_s4 = scalar_lea.hbm %s926_s3, 256 }
 0x133   : > { %p674_p7 = scmp.ne.s32.totalorder %s876_s19, %s673_s28  ;;  %p678_p0 = scmp.lt.u32.totalorder %s876_s19, %s926_s3 }
 0x134   : > { %p679_p2 = scmp.lt.u32.totalorder %s677_s4, %s673_s28  ;;  %p681_p8 = scmp.lt.u32.totalorder %s673_s28, %s876_s19 }
 0x135   : > { %p675_p9 = pnand %p674_p7, %p938_p10 }
 0x136   : > { %p680_p4 = por %p679_p2, %p678_p0 }
 0x137   : > { %p676_p12 = pneg %p675_p9 }
 0x138   : > { %p682_p11 = por %p681_p8, %p680_p4 }
 0x13a   : > { %p683_p13 = pnand %p682_p11, %p676_p12 }
 0x13c   : > { %686 = shalt.err (!%p683_p13)
}
 0x13d   : > { %564 = dma.vmem_to_hbm [thread:$0]  (%p938_p10), %s878_s10, 128, %s876_s19, %s353_s21  }
 0x13e PF: > { %p576_p1 = scmp.ge.s32.totalorder %s741_s17, 2  ;;  %s379_s7 = sand.u32 1, %s721_s12  }
 0x13f   : > { %p939_p3 = scmp.ne.s32.totalorder %s932_s24, 0  ;;  %s380_s8 = scalar_lea.sflag [#allocation5], %s379_s7 }
 0x141   : > { %p571_p5 = pnand %p576_p1, %p939_p3 }
 0x143   : > { %716 = dma.done.wait (!%p571_p5), %s380_s8, 128  }
 0x144   : > { %718 = vsyncadd (!%p571_p5), %s380_s8, 4294967168  ;;  %s17_s17 = sadd.s32 1, %s741_s17   ;;  %s940_s12 = smov %s725_s13 }
 0x145   : > { %p14_p6 = scmp.ge.s32.totalorder %s17_s17, 4   ;;  %s941_s13 = smov %s729_s14 }
 0x146   : > { %s942_s14 = smov %s823_s25  ;;  %s943_s15 = smov %s737_s16 }
 0x147   : > { %s944_s16 = smov %s946_s20  ;;  %16 = sbr.rel (!%p14_p6) target bundleno = 5 (0x5), region = 88 }
 0x14e   :  { %385 = vsyncpa [#allocation4], 1 }
 0x14f   :  { %387 = vsyncpa [#allocation4 + $0x1], 1 }
 0x150   :  { %388 = vsyncpa [#allocation5], 1 }
 0x151   :  { %390 = vsyncpa [#allocation5 + $0x1], 1 }

</bundles_post_ra>
